<compile_context>
chip_gen: v7x
topology: tpu7x:2x2x1
jax: 0.10.0
libtpu: 0.0.40
codegen_flags: <defaults>
</compile_context>

<pallas_src>
import functools

import jax
import jax.numpy as jnp
import numpy as np
from jax.experimental import pallas as pl
from jax.experimental.pallas import tpu as pltpu


# ------------------------------ fused BiLSTM kernel -------------------------------

def _bilstm_kernel(x_ref, w_in_ref, whh_ref, bias_ref, wemb_ref, bemb_ref,   # inputs
                   out_ref,                                                  # output
                   gx_buf, hist_buf,                                         # VMEM scratch
                   *, T, B, H):
    # ---- Hoisted input projection for BOTH directions as one MXU matmul ----
    # x_ref: (T*B, 2*nIn) = [x_t | x_{T-1-t}];  w_in: block-diagonal (2*nIn, 8H).
    # Gate column layout: [i_f, i_r, f_f, f_r, o_f, o_r, g_f, g_r].
    # Fused (b_ih + b_hh) bias folded in here so the serial loop does not re-add it.
    gx_buf[...] = (jnp.dot(x_ref[...], w_in_ref[...],
                           preferred_element_type=jnp.float32)
                   + bias_ref[...])

    whh = whh_ref[...]          # block-diagonal (2H, 8H), same gate column layout
    H2 = 2 * H
    H6 = 6 * H

    def step(t, carry):
        h, c = carry            # (B, 2H) each: cols [0,H) = fwd, [H,2H) = rev
        # One contiguous (B, 8H) row-block load: fwd gates for time t AND rev gates for
        # time T-1-t (the time reversal is baked into the x column concat).
        gates = gx_buf[pl.ds(t * B, B), :] + jnp.dot(
            h, whh, preferred_element_type=jnp.float32)
        # One wide sigmoid push (i|f|o for both directions), one tanh push (g both dirs).
        sig = jax.nn.sigmoid(gates[:, :H6])
        g_g = jnp.tanh(gates[:, H6:])
        i_g = sig[:, :H2]
        f_g = sig[:, H2:2 * H2]
        o_g = sig[:, 2 * H2:]
        c_new = f_g * c + i_g * g_g
        h_new = o_g * jnp.tanh(c_new)
        # Hidden-state history in PyTorch output order: row block = time, cols [fwd|rev].
        hist_buf[pl.ds(t * B, B), :H] = h_new[:, :H]              # fwd h at time t
        hist_buf[pl.ds((T - 1 - t) * B, B), H:] = h_new[:, H:]    # rev h at time T-1-t
        return (h_new, c_new)

    zeros = jnp.zeros((B, 2 * H), jnp.float32)
    jax.lax.fori_loop(0, T, step, (zeros, zeros),
                      unroll=(True if T <= 16 else 8))

    # ---- Fused output embedding: single (T*B, 2H) @ (2H, nOut) matmul + bulk write ----
    out_ref[...] = (jnp.dot(hist_buf[...], wemb_ref[...],
                            preferred_element_type=jnp.float32)
                    + bemb_ref[...])


# --------------------------- parameter packing (once) -----------------------------

def pack_params(params):
    """Repack PyTorch-layout LSTM/Linear params into the kernel's fused layouts.

    Called ONCE (outside the forward path).  Combined gate column layout:
      [i_f, i_r, f_f, f_r, o_f, o_r, g_f, g_r]   (H columns per block)
    """
    H = params["w_hh_f"].shape[1]
    n_in = params["w_ih_f"].shape[1]
    n_out = params["w_emb"].shape[0]

    def split_gates(w_t):
        # w_t: (rows, 4H) with PyTorch column order [i, f, g, o] -> return (i, f, o, g)
        return (w_t[:, 0:H], w_t[:, H:2 * H], w_t[:, 3 * H:4 * H], w_t[:, 2 * H:3 * H])

    wihf_i, wihf_f, wihf_o, wihf_g = split_gates(jnp.transpose(params["w_ih_f"]))
    wihr_i, wihr_f, wihr_o, wihr_g = split_gates(jnp.transpose(params["w_ih_r"]))
    whhf_i, whhf_f, whhf_o, whhf_g = split_gates(jnp.transpose(params["w_hh_f"]))
    whhr_i, whhr_f, whhr_o, whhr_g = split_gates(jnp.transpose(params["w_hh_r"]))

    z_in = jnp.zeros((n_in, H), jnp.float32)
    z_h = jnp.zeros((H, H), jnp.float32)

    # Block-diagonal input projection: rows [0,nIn) see x_t, rows [nIn,2nIn) see x_{T-1-t}.
    w_in = jnp.concatenate([
        jnp.concatenate([wihf_i, z_in, wihf_f, z_in, wihf_o, z_in, wihf_g, z_in], axis=1),
        jnp.concatenate([z_in, wihr_i, z_in, wihr_f, z_in, wihr_o, z_in, wihr_g], axis=1),
    ], axis=0)                                                   # (2*nIn, 8H)

    # Block-diagonal recurrent weight: rows [0,H) = h_fwd, rows [H,2H) = h_rev.
    whh_bd = jnp.concatenate([
        jnp.concatenate([whhf_i, z_h, whhf_f, z_h, whhf_o, z_h, whhf_g, z_h], axis=1),
        jnp.concatenate([z_h, whhr_i, z_h, whhr_f, z_h, whhr_o, z_h, whhr_g], axis=1),
    ], axis=0)                                                   # (2H, 8H)

    bf = params["b_ih_f"] + params["b_hh_f"]                     # (4H,) order [i,f,g,o]
    br = params["b_ih_r"] + params["b_hh_r"]
    bias = jnp.concatenate([
        bf[0:H], br[0:H],                    # i_f, i_r
        bf[H:2 * H], br[H:2 * H],            # f_f, f_r
        bf[3 * H:4 * H], br[3 * H:4 * H],    # o_f, o_r
        bf[2 * H:3 * H], br[2 * H:3 * H],    # g_f, g_r
    ]).reshape(1, 8 * H)

    wemb = jnp.transpose(params["w_emb"])                        # (2H, nOut), rows [fwd|rev]
    bemb = params["b_emb"].reshape(1, n_out)

    return {"w_in": w_in, "whh": whh_bd, "bias": bias, "wemb": wemb, "bemb": bemb}


# ------------------------------ full module forward -------------------------------

def bidirectional_lstm_forward(x, packed):
    """Equivalent of BidirectionalLSTM.forward. x:(T,b,nIn) -> (T,b,nOut)."""
    T, B, n_in = x.shape
    H = packed["whh"].shape[0] // 2
    n_out = packed["wemb"].shape[1]

    # 2D, lane-dense kernel I/O: all (T,B,.) reshapes stay in the wrapper.
    x2d = x.reshape(T * B, n_in)
    xrev2d = x[::-1].reshape(T * B, n_in)                 # time-reversed input for rev dir
    x_comb = jnp.concatenate([x2d, xrev2d], axis=1)       # (T*B, 2*nIn)

    kernel = functools.partial(_bilstm_kernel, T=T, B=B, H=H)

    # Single grid step: everything lives whole in VMEM, one DMA in / one DMA out.
    out2d = pl.pallas_call(
        kernel,
        out_shape=jax.ShapeDtypeStruct((T * B, n_out), jnp.float32),
        scratch_shapes=[
            pltpu.VMEM((T * B, 8 * H), jnp.float32),   # precomputed input gates (rev pre-reversed)
            pltpu.VMEM((T * B, 2 * H), jnp.float32),   # hidden-state history [h_fwd | h_rev]
        ],
        compiler_params=pltpu.CompilerParams(vmem_limit_bytes=32 * 1024 * 1024),
    )(x_comb, packed["w_in"], packed["whh"], packed["bias"],
      packed["wemb"], packed["bemb"])

    return out2d.reshape(T, B, n_out)


# --------------------------------- pure-JAX ref -----------------------------------

def _lstm_dir_ref(x, w_ih, w_hh, b_ih, b_hh, reverse):
    T, b, _ = x.shape
    H = w_hh.shape[1]
    xs = x[::-1] if reverse else x

    def step(carry, xt):
        h, c = carry
        gates = xt @ w_ih.T + h @ w_hh.T + b_ih + b_hh
        i = jax.nn.sigmoid(gates[:, :H])
        f = jax.nn.sigmoid(gates[:, H:2 * H])
        g = jnp.tanh(gates[:, 2 * H:3 * H])
        o = jax.nn.sigmoid(gates[:, 3 * H:])
        c = f * c + i * g
        h = o * jnp.tanh(c)
        return (h, c), h

    init = (jnp.zeros((b, H), jnp.float32), jnp.zeros((b, H), jnp.float32))
    _, hs = jax.lax.scan(step, init, xs)
    return hs[::-1] if reverse else hs


def bidirectional_lstm_ref(x, p):
    T, b, _ = x.shape
    h_f = _lstm_dir_ref(x, p["w_ih_f"], p["w_hh_f"], p["b_ih_f"], p["b_hh_f"], False)
    h_r = _lstm_dir_ref(x, p["w_ih_r"], p["w_hh_r"], p["b_ih_r"], p["b_hh_r"], True)
    rec = jnp.concatenate([h_f, h_r], axis=-1).reshape(T * b, -1)
    out = rec @ p["w_emb"].T + p["b_emb"]
    return out.reshape(T, b, -1)


# ------------------------------------- main ---------------------------------------

if __name__ == "__main__":
    T, B, N_IN, N_HIDDEN, N_OUT = 8, 2, 16, 32, 16

    key = jax.random.PRNGKey(0)
    keys = jax.random.split(key, 12)
    k = 1.0 / np.sqrt(N_HIDDEN)
    u = lambda kk, shape: jax.random.uniform(kk, shape, jnp.float32, -k, k)

    params = {
        # forward direction (PyTorch: weight_ih_l0, weight_hh_l0, bias_ih_l0, bias_hh_l0)
        "w_ih_f": u(keys[0], (4 * N_HIDDEN, N_IN)),
        "w_hh_f": u(keys[1], (4 * N_HIDDEN, N_HIDDEN)),
        "b_ih_f": u(keys[2], (4 * N_HIDDEN,)),
        "b_hh_f": u(keys[3], (4 * N_HIDDEN,)),
        # reverse direction (PyTorch: *_l0_reverse)
        "w_ih_r": u(keys[4], (4 * N_HIDDEN, N_IN)),
        "w_hh_r": u(keys[5], (4 * N_HIDDEN, N_HIDDEN)),
        "b_ih_r": u(keys[6], (4 * N_HIDDEN,)),
        "b_hh_r": u(keys[7], (4 * N_HIDDEN,)),
        # embedding Linear(2H, nOut)
        "w_emb": u(keys[8], (N_OUT, 2 * N_HIDDEN)),
        "b_emb": u(keys[9], (N_OUT,)),
    }

    x = jax.random.normal(keys[10], (T, B, N_IN), jnp.float32)

    # Parameter repacking hoisted out of the forward path (done once).
    packed = jax.tree_util.tree_map(jax.block_until_ready, pack_params(params))

    fwd = jax.jit(bidirectional_lstm_forward)
    out = jax.block_until_ready(fwd(x, packed))

    ref = jax.block_until_ready(bidirectional_lstm_ref(x, params))
    np.testing.assert_allclose(np.asarray(out), np.asarray(ref), atol=1e-5, rtol=1e-5)
    assert out.shape == (T, B, N_OUT)

    print("KERNEL_OK")
</pallas_src>

<mosaic_0001>
module attributes {stable_mosaic.version = 11 : i64} {
  func.func @_bilstm_kernel(%arg0: memref<16x32xf32, #tpu.memory_space<vmem>>, %arg1: memref<32x256xf32, #tpu.memory_space<vmem>>, %arg2: memref<64x256xf32, #tpu.memory_space<vmem>>, %arg3: memref<1x256xf32, #tpu.memory_space<vmem>>, %arg4: memref<64x16xf32, #tpu.memory_space<vmem>>, %arg5: memref<1x16xf32, #tpu.memory_space<vmem>>, %arg6: memref<16x16xf32, #tpu.memory_space<vmem>>, %arg7: memref<16x256xf32, #tpu.memory_space<vmem>>, %arg8: memref<16x64xf32, #tpu.memory_space<vmem>>) attributes {dimension_semantics = [], scalar_prefetch = 0 : i64, scratch_operands = 2 : i64, tpu.core_type = #tpu.core_type<tc>} {
    %c0 = arith.constant 0 : index
    %c0_0 = arith.constant 0 : index
    %0 = vector.load %arg0[%c0, %c0_0] : memref<16x32xf32, #tpu.memory_space<vmem>>, vector<16x32xf32>
    %c0_1 = arith.constant 0 : index
    %c0_2 = arith.constant 0 : index
    %1 = vector.load %arg1[%c0_1, %c0_2] : memref<32x256xf32, #tpu.memory_space<vmem>>, vector<32x256xf32>
    %cst = arith.constant dense<0.000000e+00> : vector<16x256xf32>
    %2 = tpu.matmul %0, %1, %cst {dimension_numbers = #tpu.dot_dimension_numbers<[1], [0], [0], [1], [0, 0, 1, 1], [], []>} : vector<16x32xf32>, vector<32x256xf32>, vector<16x256xf32> -> vector<16x256xf32>
    %c0_3 = arith.constant 0 : index
    %c0_4 = arith.constant 0 : index
    %3 = vector.load %arg3[%c0_3, %c0_4] : memref<1x256xf32, #tpu.memory_space<vmem>>, vector<1x256xf32>
    %4 = vector.broadcast %3 : vector<1x256xf32> to vector<16x256xf32>
    %5 = arith.addf %2, %4 : vector<16x256xf32>
    %c0_5 = arith.constant 0 : index
    %c0_6 = arith.constant 0 : index
    %6 = vector.load %arg7[%c0_5, %c0_6] : memref<16x256xf32, #tpu.memory_space<vmem>>, vector<16x256xf32>
    tpu.vector_store %arg7[%c0_5, %c0_6], %5 {strides = array<i32>} : memref<16x256xf32, #tpu.memory_space<vmem>>, vector<16x256xf32>,
    %c0_7 = arith.constant 0 : index
    %c0_8 = arith.constant 0 : index
    %7 = vector.load %arg2[%c0_7, %c0_8] : memref<64x256xf32, #tpu.memory_space<vmem>>, vector<64x256xf32>
    %cst_9 = arith.constant 0.000000e+00 : f32
    %8 = vector.broadcast %cst_9 : f32 to vector<2x64xf32>
    %c0_i32 = arith.constant 0 : i32
    %c2_i32 = arith.constant 2 : i32
    %9 = arith.muli %c0_i32, %c2_i32 : i32
    %10 = arith.index_cast %9 : i32 to index
    %c0_10 = arith.constant 0 : index
    %11 = vector.load %arg7[%10, %c0_10] : memref<16x256xf32, #tpu.memory_space<vmem>>, vector<2x256xf32>
    %cst_11 = arith.constant dense<0.000000e+00> : vector<2x256xf32>
    %12 = tpu.matmul %8, %7, %cst_11 {dimension_numbers = #tpu.dot_dimension_numbers<[1], [0], [0], [1], [0, 0, 1, 1], [], []>} : vector<2x64xf32>, vector<64x256xf32>, vector<2x256xf32> -> vector<2x256xf32>
    %13 = arith.addf %11, %12 : vector<2x256xf32>
    %14 = vector.extract_strided_slice %13 {offsets = [0, 0], sizes = [2, 192], strides = [1, 1]} : vector<2x256xf32> to vector<2x192xf32>
    %15 = arith.negf %14 : vector<2x192xf32>
    %16 = math.exp %15 : vector<2x192xf32>
    %cst_12 = arith.constant 1.000000e+00 : f32
    %17 = vector.broadcast %cst_12 : f32 to vector<2x192xf32>
    %18 = arith.addf %17, %16 : vector<2x192xf32>
    %19 = arith.divf %17, %18 : vector<2x192xf32>
    %20 = vector.extract_strided_slice %13 {offsets = [0, 192], sizes = [2, 64], strides = [1, 1]} : vector<2x256xf32> to vector<2x64xf32>
    %21 = math.tanh %20 : vector<2x64xf32>
    %22 = vector.extract_strided_slice %19 {offsets = [0, 0], sizes = [2, 64], strides = [1, 1]} : vector<2x192xf32> to vector<2x64xf32>
    %23 = vector.extract_strided_slice %19 {offsets = [0, 64], sizes = [2, 64], strides = [1, 1]} : vector<2x192xf32> to vector<2x64xf32>
    %24 = vector.extract_strided_slice %19 {offsets = [0, 128], sizes = [2, 64], strides = [1, 1]} : vector<2x192xf32> to vector<2x64xf32>
    %25 = arith.mulf %23, %8 : vector<2x64xf32>
    %26 = arith.mulf %22, %21 : vector<2x64xf32>
    %27 = arith.addf %25, %26 : vector<2x64xf32>
    %28 = math.tanh %27 : vector<2x64xf32>
    %29 = arith.mulf %24, %28 : vector<2x64xf32>
    %30 = vector.extract_strided_slice %29 {offsets = [0, 0], sizes = [2, 32], strides = [1, 1]} : vector<2x64xf32> to vector<2x32xf32>
    %c2_i32_13 = arith.constant 2 : i32
    %31 = arith.muli %c0_i32, %c2_i32_13 : i32
    %32 = arith.index_cast %31 : i32 to index
    %c0_14 = arith.constant 0 : index
    %33 = vector.load %arg8[%32, %c0_14] : memref<16x64xf32, #tpu.memory_space<vmem>>, vector<2x32xf32>
    tpu.vector_store %arg8[%32, %c0_14], %30 {strides = array<i32>} : memref<16x64xf32, #tpu.memory_space<vmem>>, vector<2x32xf32>,
    %34 = vector.extract_strided_slice %29 {offsets = [0, 32], sizes = [2, 32], strides = [1, 1]} : vector<2x64xf32> to vector<2x32xf32>
    %c7_i32 = arith.constant 7 : i32
    %35 = arith.subi %c7_i32, %c0_i32 : i32
    %c2_i32_15 = arith.constant 2 : i32
    %36 = arith.muli %35, %c2_i32_15 : i32
    %37 = arith.index_cast %36 : i32 to index
    %c32 = arith.constant 32 : index
    %38 = vector.load %arg8[%37, %c32] : memref<16x64xf32, #tpu.memory_space<vmem>>, vector<2x32xf32>
    tpu.vector_store %arg8[%37, %c32], %34 {strides = array<i32>} : memref<16x64xf32, #tpu.memory_space<vmem>>, vector<2x32xf32>,
    %c1_i32 = arith.constant 1 : i32
    %c2_i32_16 = arith.constant 2 : i32
    %39 = arith.muli %c1_i32, %c2_i32_16 : i32
    %40 = arith.index_cast %39 : i32 to index
    %c0_17 = arith.constant 0 : index
    %41 = vector.load %arg7[%40, %c0_17] : memref<16x256xf32, #tpu.memory_space<vmem>>, vector<2x256xf32>
    %cst_18 = arith.constant dense<0.000000e+00> : vector<2x256xf32>
    %42 = tpu.matmul %29, %7, %cst_18 {dimension_numbers = #tpu.dot_dimension_numbers<[1], [0], [0], [1], [0, 0, 1, 1], [], []>} : vector<2x64xf32>, vector<64x256xf32>, vector<2x256xf32> -> vector<2x256xf32>
    %43 = arith.addf %41, %42 : vector<2x256xf32>
    %44 = vector.extract_strided_slice %43 {offsets = [0, 0], sizes = [2, 192], strides = [1, 1]} : vector<2x256xf32> to vector<2x192xf32>
    %45 = arith.negf %44 : vector<2x192xf32>
    %46 = math.exp %45 : vector<2x192xf32>
    %cst_19 = arith.constant 1.000000e+00 : f32
    %47 = vector.broadcast %cst_19 : f32 to vector<2x192xf32>
    %48 = arith.addf %47, %46 : vector<2x192xf32>
    %49 = arith.divf %47, %48 : vector<2x192xf32>
    %50 = vector.extract_strided_slice %43 {offsets = [0, 192], sizes = [2, 64], strides = [1, 1]} : vector<2x256xf32> to vector<2x64xf32>
    %51 = math.tanh %50 : vector<2x64xf32>
    %52 = vector.extract_strided_slice %49 {offsets = [0, 0], sizes = [2, 64], strides = [1, 1]} : vector<2x192xf32> to vector<2x64xf32>
    %53 = vector.extract_strided_slice %49 {offsets = [0, 64], sizes = [2, 64], strides = [1, 1]} : vector<2x192xf32> to vector<2x64xf32>
    %54 = vector.extract_strided_slice %49 {offsets = [0, 128], sizes = [2, 64], strides = [1, 1]} : vector<2x192xf32> to vector<2x64xf32>
    %55 = arith.mulf %53, %27 : vector<2x64xf32>
    %56 = arith.mulf %52, %51 : vector<2x64xf32>
    %57 = arith.addf %55, %56 : vector<2x64xf32>
    %58 = math.tanh %57 : vector<2x64xf32>
    %59 = arith.mulf %54, %58 : vector<2x64xf32>
    %60 = vector.extract_strided_slice %59 {offsets = [0, 0], sizes = [2, 32], strides = [1, 1]} : vector<2x64xf32> to vector<2x32xf32>
    %c2_i32_20 = arith.constant 2 : i32
    %61 = arith.muli %c1_i32, %c2_i32_20 : i32
    %62 = arith.index_cast %61 : i32 to index
    %c0_21 = arith.constant 0 : index
    %63 = vector.load %arg8[%62, %c0_21] : memref<16x64xf32, #tpu.memory_space<vmem>>, vector<2x32xf32>
    tpu.vector_store %arg8[%62, %c0_21], %60 {strides = array<i32>} : memref<16x64xf32, #tpu.memory_space<vmem>>, vector<2x32xf32>,
    %64 = vector.extract_strided_slice %59 {offsets = [0, 32], sizes = [2, 32], strides = [1, 1]} : vector<2x64xf32> to vector<2x32xf32>
    %c7_i32_22 = arith.constant 7 : i32
    %65 = arith.subi %c7_i32_22, %c1_i32 : i32
    %c2_i32_23 = arith.constant 2 : i32
    %66 = arith.muli %65, %c2_i32_23 : i32
    %67 = arith.index_cast %66 : i32 to index
    %c32_24 = arith.constant 32 : index
    %68 = vector.load %arg8[%67, %c32_24] : memref<16x64xf32, #tpu.memory_space<vmem>>, vector<2x32xf32>
    tpu.vector_store %arg8[%67, %c32_24], %64 {strides = array<i32>} : memref<16x64xf32, #tpu.memory_space<vmem>>, vector<2x32xf32>,
    %c2_i32_25 = arith.constant 2 : i32
    %c2_i32_26 = arith.constant 2 : i32
    %69 = arith.muli %c2_i32_25, %c2_i32_26 : i32
    %70 = arith.index_cast %69 : i32 to index
    %c0_27 = arith.constant 0 : index
    %71 = vector.load %arg7[%70, %c0_27] : memref<16x256xf32, #tpu.memory_space<vmem>>, vector<2x256xf32>
    %cst_28 = arith.constant dense<0.000000e+00> : vector<2x256xf32>
    %72 = tpu.matmul %59, %7, %cst_28 {dimension_numbers = #tpu.dot_dimension_numbers<[1], [0], [0], [1], [0, 0, 1, 1], [], []>} : vector<2x64xf32>, vector<64x256xf32>, vector<2x256xf32> -> vector<2x256xf32>
    %73 = arith.addf %71, %72 : vector<2x256xf32>
    %74 = vector.extract_strided_slice %73 {offsets = [0, 0], sizes = [2, 192], strides = [1, 1]} : vector<2x256xf32> to vector<2x192xf32>
    %75 = arith.negf %74 : vector<2x192xf32>
    %76 = math.exp %75 : vector<2x192xf32>
    %cst_29 = arith.constant 1.000000e+00 : f32
    %77 = vector.broadcast %cst_29 : f32 to vector<2x192xf32>
    %78 = arith.addf %77, %76 : vector<2x192xf32>
    %79 = arith.divf %77, %78 : vector<2x192xf32>
    %80 = vector.extract_strided_slice %73 {offsets = [0, 192], sizes = [2, 64], strides = [1, 1]} : vector<2x256xf32> to vector<2x64xf32>
    %81 = math.tanh %80 : vector<2x64xf32>
    %82 = vector.extract_strided_slice %79 {offsets = [0, 0], sizes = [2, 64], strides = [1, 1]} : vector<2x192xf32> to vector<2x64xf32>
    %83 = vector.extract_strided_slice %79 {offsets = [0, 64], sizes = [2, 64], strides = [1, 1]} : vector<2x192xf32> to vector<2x64xf32>
    %84 = vector.extract_strided_slice %79 {offsets = [0, 128], sizes = [2, 64], strides = [1, 1]} : vector<2x192xf32> to vector<2x64xf32>
    %85 = arith.mulf %83, %57 : vector<2x64xf32>
    %86 = arith.mulf %82, %81 : vector<2x64xf32>
    %87 = arith.addf %85, %86 : vector<2x64xf32>
    %88 = math.tanh %87 : vector<2x64xf32>
    %89 = arith.mulf %84, %88 : vector<2x64xf32>
    %90 = vector.extract_strided_slice %89 {offsets = [0, 0], sizes = [2, 32], strides = [1, 1]} : vector<2x64xf32> to vector<2x32xf32>
    %c2_i32_30 = arith.constant 2 : i32
    %91 = arith.muli %c2_i32_25, %c2_i32_30 : i32
    %92 = arith.index_cast %91 : i32 to index
    %c0_31 = arith.constant 0 : index
    %93 = vector.load %arg8[%92, %c0_31] : memref<16x64xf32, #tpu.memory_space<vmem>>, vector<2x32xf32>
    tpu.vector_store %arg8[%92, %c0_31], %90 {strides = array<i32>} : memref<16x64xf32, #tpu.memory_space<vmem>>, vector<2x32xf32>,
    %94 = vector.extract_strided_slice %89 {offsets = [0, 32], sizes = [2, 32], strides = [1, 1]} : vector<2x64xf32> to vector<2x32xf32>
    %c7_i32_32 = arith.constant 7 : i32
    %95 = arith.subi %c7_i32_32, %c2_i32_25 : i32
    %c2_i32_33 = arith.constant 2 : i32
    %96 = arith.muli %95, %c2_i32_33 : i32
    %97 = arith.index_cast %96 : i32 to index
    %c32_34 = arith.constant 32 : index
    %98 = vector.load %arg8[%97, %c32_34] : memref<16x64xf32, #tpu.memory_space<vmem>>, vector<2x32xf32>
    tpu.vector_store %arg8[%97, %c32_34], %94 {strides = array<i32>} : memref<16x64xf32, #tpu.memory_space<vmem>>, vector<2x32xf32>,
    %c3_i32 = arith.constant 3 : i32
    %c2_i32_35 = arith.constant 2 : i32
    %99 = arith.muli %c3_i32, %c2_i32_35 : i32
    %100 = arith.index_cast %99 : i32 to index
    %c0_36 = arith.constant 0 : index
    %101 = vector.load %arg7[%100, %c0_36] : memref<16x256xf32, #tpu.memory_space<vmem>>, vector<2x256xf32>
    %cst_37 = arith.constant dense<0.000000e+00> : vector<2x256xf32>
    %102 = tpu.matmul %89, %7, %cst_37 {dimension_numbers = #tpu.dot_dimension_numbers<[1], [0], [0], [1], [0, 0, 1, 1], [], []>} : vector<2x64xf32>, vector<64x256xf32>, vector<2x256xf32> -> vector<2x256xf32>
    %103 = arith.addf %101, %102 : vector<2x256xf32>
    %104 = vector.extract_strided_slice %103 {offsets = [0, 0], sizes = [2, 192], strides = [1, 1]} : vector<2x256xf32> to vector<2x192xf32>
    %105 = arith.negf %104 : vector<2x192xf32>
    %106 = math.exp %105 : vector<2x192xf32>
    %cst_38 = arith.constant 1.000000e+00 : f32
    %107 = vector.broadcast %cst_38 : f32 to vector<2x192xf32>
    %108 = arith.addf %107, %106 : vector<2x192xf32>
    %109 = arith.divf %107, %108 : vector<2x192xf32>
    %110 = vector.extract_strided_slice %103 {offsets = [0, 192], sizes = [2, 64], strides = [1, 1]} : vector<2x256xf32> to vector<2x64xf32>
    %111 = math.tanh %110 : vector<2x64xf32>
    %112 = vector.extract_strided_slice %109 {offsets = [0, 0], sizes = [2, 64], strides = [1, 1]} : vector<2x192xf32> to vector<2x64xf32>
    %113 = vector.extract_strided_slice %109 {offsets = [0, 64], sizes = [2, 64], strides = [1, 1]} : vector<2x192xf32> to vector<2x64xf32>
    %114 = vector.extract_strided_slice %109 {offsets = [0, 128], sizes = [2, 64], strides = [1, 1]} : vector<2x192xf32> to vector<2x64xf32>
    %115 = arith.mulf %113, %87 : vector<2x64xf32>
    %116 = arith.mulf %112, %111 : vector<2x64xf32>
    %117 = arith.addf %115, %116 : vector<2x64xf32>
    %118 = math.tanh %117 : vector<2x64xf32>
    %119 = arith.mulf %114, %118 : vector<2x64xf32>
    %120 = vector.extract_strided_slice %119 {offsets = [0, 0], sizes = [2, 32], strides = [1, 1]} : vector<2x64xf32> to vector<2x32xf32>
    %c2_i32_39 = arith.constant 2 : i32
    %121 = arith.muli %c3_i32, %c2_i32_39 : i32
    %122 = arith.index_cast %121 : i32 to index
    %c0_40 = arith.constant 0 : index
    %123 = vector.load %arg8[%122, %c0_40] : memref<16x64xf32, #tpu.memory_space<vmem>>, vector<2x32xf32>
    tpu.vector_store %arg8[%122, %c0_40], %120 {strides = array<i32>} : memref<16x64xf32, #tpu.memory_space<vmem>>, vector<2x32xf32>,
    %124 = vector.extract_strided_slice %119 {offsets = [0, 32], sizes = [2, 32], strides = [1, 1]} : vector<2x64xf32> to vector<2x32xf32>
    %c7_i32_41 = arith.constant 7 : i32
    %125 = arith.subi %c7_i32_41, %c3_i32 : i32
    %c2_i32_42 = arith.constant 2 : i32
    %126 = arith.muli %125, %c2_i32_42 : i32
    %127 = arith.index_cast %126 : i32 to index
    %c32_43 = arith.constant 32 : index
    %128 = vector.load %arg8[%127, %c32_43] : memref<16x64xf32, #tpu.memory_space<vmem>>, vector<2x32xf32>
    tpu.vector_store %arg8[%127, %c32_43], %124 {strides = array<i32>} : memref<16x64xf32, #tpu.memory_space<vmem>>, vector<2x32xf32>,
    %c4_i32 = arith.constant 4 : i32
    %c2_i32_44 = arith.constant 2 : i32
    %129 = arith.muli %c4_i32, %c2_i32_44 : i32
    %130 = arith.index_cast %129 : i32 to index
    %c0_45 = arith.constant 0 : index
    %131 = vector.load %arg7[%130, %c0_45] : memref<16x256xf32, #tpu.memory_space<vmem>>, vector<2x256xf32>
    %cst_46 = arith.constant dense<0.000000e+00> : vector<2x256xf32>
    %132 = tpu.matmul %119, %7, %cst_46 {dimension_numbers = #tpu.dot_dimension_numbers<[1], [0], [0], [1], [0, 0, 1, 1], [], []>} : vector<2x64xf32>, vector<64x256xf32>, vector<2x256xf32> -> vector<2x256xf32>
    %133 = arith.addf %131, %132 : vector<2x256xf32>
    %134 = vector.extract_strided_slice %133 {offsets = [0, 0], sizes = [2, 192], strides = [1, 1]} : vector<2x256xf32> to vector<2x192xf32>
    %135 = arith.negf %134 : vector<2x192xf32>
    %136 = math.exp %135 : vector<2x192xf32>
    %cst_47 = arith.constant 1.000000e+00 : f32
    %137 = vector.broadcast %cst_47 : f32 to vector<2x192xf32>
    %138 = arith.addf %137, %136 : vector<2x192xf32>
    %139 = arith.divf %137, %138 : vector<2x192xf32>
    %140 = vector.extract_strided_slice %133 {offsets = [0, 192], sizes = [2, 64], strides = [1, 1]} : vector<2x256xf32> to vector<2x64xf32>
    %141 = math.tanh %140 : vector<2x64xf32>
    %142 = vector.extract_strided_slice %139 {offsets = [0, 0], sizes = [2, 64], strides = [1, 1]} : vector<2x192xf32> to vector<2x64xf32>
    %143 = vector.extract_strided_slice %139 {offsets = [0, 64], sizes = [2, 64], strides = [1, 1]} : vector<2x192xf32> to vector<2x64xf32>
    %144 = vector.extract_strided_slice %139 {offsets = [0, 128], sizes = [2, 64], strides = [1, 1]} : vector<2x192xf32> to vector<2x64xf32>
    %145 = arith.mulf %143, %117 : vector<2x64xf32>
    %146 = arith.mulf %142, %141 : vector<2x64xf32>
    %147 = arith.addf %145, %146 : vector<2x64xf32>
    %148 = math.tanh %147 : vector<2x64xf32>
    %149 = arith.mulf %144, %148 : vector<2x64xf32>
    %150 = vector.extract_strided_slice %149 {offsets = [0, 0], sizes = [2, 32], strides = [1, 1]} : vector<2x64xf32> to vector<2x32xf32>
    %c2_i32_48 = arith.constant 2 : i32
    %151 = arith.muli %c4_i32, %c2_i32_48 : i32
    %152 = arith.index_cast %151 : i32 to index
    %c0_49 = arith.constant 0 : index
    %153 = vector.load %arg8[%152, %c0_49] : memref<16x64xf32, #tpu.memory_space<vmem>>, vector<2x32xf32>
    tpu.vector_store %arg8[%152, %c0_49], %150 {strides = array<i32>} : memref<16x64xf32, #tpu.memory_space<vmem>>, vector<2x32xf32>,
    %154 = vector.extract_strided_slice %149 {offsets = [0, 32], sizes = [2, 32], strides = [1, 1]} : vector<2x64xf32> to vector<2x32xf32>
    %c7_i32_50 = arith.constant 7 : i32
    %155 = arith.subi %c7_i32_50, %c4_i32 : i32
    %c2_i32_51 = arith.constant 2 : i32
    %156 = arith.muli %155, %c2_i32_51 : i32
    %157 = arith.index_cast %156 : i32 to index
    %c32_52 = arith.constant 32 : index
    %158 = vector.load %arg8[%157, %c32_52] : memref<16x64xf32, #tpu.memory_space<vmem>>, vector<2x32xf32>
    tpu.vector_store %arg8[%157, %c32_52], %154 {strides = array<i32>} : memref<16x64xf32, #tpu.memory_space<vmem>>, vector<2x32xf32>,
    %c5_i32 = arith.constant 5 : i32
    %c2_i32_53 = arith.constant 2 : i32
    %159 = arith.muli %c5_i32, %c2_i32_53 : i32
    %160 = arith.index_cast %159 : i32 to index
    %c0_54 = arith.constant 0 : index
    %161 = vector.load %arg7[%160, %c0_54] : memref<16x256xf32, #tpu.memory_space<vmem>>, vector<2x256xf32>
    %cst_55 = arith.constant dense<0.000000e+00> : vector<2x256xf32>
    %162 = tpu.matmul %149, %7, %cst_55 {dimension_numbers = #tpu.dot_dimension_numbers<[1], [0], [0], [1], [0, 0, 1, 1], [], []>} : vector<2x64xf32>, vector<64x256xf32>, vector<2x256xf32> -> vector<2x256xf32>
    %163 = arith.addf %161, %162 : vector<2x256xf32>
    %164 = vector.extract_strided_slice %163 {offsets = [0, 0], sizes = [2, 192], strides = [1, 1]} : vector<2x256xf32> to vector<2x192xf32>
    %165 = arith.negf %164 : vector<2x192xf32>
    %166 = math.exp %165 : vector<2x192xf32>
    %cst_56 = arith.constant 1.000000e+00 : f32
    %167 = vector.broadcast %cst_56 : f32 to vector<2x192xf32>
    %168 = arith.addf %167, %166 : vector<2x192xf32>
    %169 = arith.divf %167, %168 : vector<2x192xf32>
    %170 = vector.extract_strided_slice %163 {offsets = [0, 192], sizes = [2, 64], strides = [1, 1]} : vector<2x256xf32> to vector<2x64xf32>
    %171 = math.tanh %170 : vector<2x64xf32>
    %172 = vector.extract_strided_slice %169 {offsets = [0, 0], sizes = [2, 64], strides = [1, 1]} : vector<2x192xf32> to vector<2x64xf32>
    %173 = vector.extract_strided_slice %169 {offsets = [0, 64], sizes = [2, 64], strides = [1, 1]} : vector<2x192xf32> to vector<2x64xf32>
    %174 = vector.extract_strided_slice %169 {offsets = [0, 128], sizes = [2, 64], strides = [1, 1]} : vector<2x192xf32> to vector<2x64xf32>
    %175 = arith.mulf %173, %147 : vector<2x64xf32>
    %176 = arith.mulf %172, %171 : vector<2x64xf32>
    %177 = arith.addf %175, %176 : vector<2x64xf32>
    %178 = math.tanh %177 : vector<2x64xf32>
    %179 = arith.mulf %174, %178 : vector<2x64xf32>
    %180 = vector.extract_strided_slice %179 {offsets = [0, 0], sizes = [2, 32], strides = [1, 1]} : vector<2x64xf32> to vector<2x32xf32>
    %c2_i32_57 = arith.constant 2 : i32
    %181 = arith.muli %c5_i32, %c2_i32_57 : i32
    %182 = arith.index_cast %181 : i32 to index
    %c0_58 = arith.constant 0 : index
    %183 = vector.load %arg8[%182, %c0_58] : memref<16x64xf32, #tpu.memory_space<vmem>>, vector<2x32xf32>
    tpu.vector_store %arg8[%182, %c0_58], %180 {strides = array<i32>} : memref<16x64xf32, #tpu.memory_space<vmem>>, vector<2x32xf32>,
    %184 = vector.extract_strided_slice %179 {offsets = [0, 32], sizes = [2, 32], strides = [1, 1]} : vector<2x64xf32> to vector<2x32xf32>
    %c7_i32_59 = arith.constant 7 : i32
    %185 = arith.subi %c7_i32_59, %c5_i32 : i32
    %c2_i32_60 = arith.constant 2 : i32
    %186 = arith.muli %185, %c2_i32_60 : i32
    %187 = arith.index_cast %186 : i32 to index
    %c32_61 = arith.constant 32 : index
    %188 = vector.load %arg8[%187, %c32_61] : memref<16x64xf32, #tpu.memory_space<vmem>>, vector<2x32xf32>
    tpu.vector_store %arg8[%187, %c32_61], %184 {strides = array<i32>} : memref<16x64xf32, #tpu.memory_space<vmem>>, vector<2x32xf32>,
    %c6_i32 = arith.constant 6 : i32
    %c2_i32_62 = arith.constant 2 : i32
    %189 = arith.muli %c6_i32, %c2_i32_62 : i32
    %190 = arith.index_cast %189 : i32 to index
    %c0_63 = arith.constant 0 : index
    %191 = vector.load %arg7[%190, %c0_63] : memref<16x256xf32, #tpu.memory_space<vmem>>, vector<2x256xf32>
    %cst_64 = arith.constant dense<0.000000e+00> : vector<2x256xf32>
    %192 = tpu.matmul %179, %7, %cst_64 {dimension_numbers = #tpu.dot_dimension_numbers<[1], [0], [0], [1], [0, 0, 1, 1], [], []>} : vector<2x64xf32>, vector<64x256xf32>, vector<2x256xf32> -> vector<2x256xf32>
    %193 = arith.addf %191, %192 : vector<2x256xf32>
    %194 = vector.extract_strided_slice %193 {offsets = [0, 0], sizes = [2, 192], strides = [1, 1]} : vector<2x256xf32> to vector<2x192xf32>
    %195 = arith.negf %194 : vector<2x192xf32>
    %196 = math.exp %195 : vector<2x192xf32>
    %cst_65 = arith.constant 1.000000e+00 : f32
    %197 = vector.broadcast %cst_65 : f32 to vector<2x192xf32>
    %198 = arith.addf %197, %196 : vector<2x192xf32>
    %199 = arith.divf %197, %198 : vector<2x192xf32>
    %200 = vector.extract_strided_slice %193 {offsets = [0, 192], sizes = [2, 64], strides = [1, 1]} : vector<2x256xf32> to vector<2x64xf32>
    %201 = math.tanh %200 : vector<2x64xf32>
    %202 = vector.extract_strided_slice %199 {offsets = [0, 0], sizes = [2, 64], strides = [1, 1]} : vector<2x192xf32> to vector<2x64xf32>
    %203 = vector.extract_strided_slice %199 {offsets = [0, 64], sizes = [2, 64], strides = [1, 1]} : vector<2x192xf32> to vector<2x64xf32>
    %204 = vector.extract_strided_slice %199 {offsets = [0, 128], sizes = [2, 64], strides = [1, 1]} : vector<2x192xf32> to vector<2x64xf32>
    %205 = arith.mulf %203, %177 : vector<2x64xf32>
    %206 = arith.mulf %202, %201 : vector<2x64xf32>
    %207 = arith.addf %205, %206 : vector<2x64xf32>
    %208 = math.tanh %207 : vector<2x64xf32>
    %209 = arith.mulf %204, %208 : vector<2x64xf32>
    %210 = vector.extract_strided_slice %209 {offsets = [0, 0], sizes = [2, 32], strides = [1, 1]} : vector<2x64xf32> to vector<2x32xf32>
    %c2_i32_66 = arith.constant 2 : i32
    %211 = arith.muli %c6_i32, %c2_i32_66 : i32
    %212 = arith.index_cast %211 : i32 to index
    %c0_67 = arith.constant 0 : index
    %213 = vector.load %arg8[%212, %c0_67] : memref<16x64xf32, #tpu.memory_space<vmem>>, vector<2x32xf32>
    tpu.vector_store %arg8[%212, %c0_67], %210 {strides = array<i32>} : memref<16x64xf32, #tpu.memory_space<vmem>>, vector<2x32xf32>,
    %214 = vector.extract_strided_slice %209 {offsets = [0, 32], sizes = [2, 32], strides = [1, 1]} : vector<2x64xf32> to vector<2x32xf32>
    %c7_i32_68 = arith.constant 7 : i32
    %215 = arith.subi %c7_i32_68, %c6_i32 : i32
    %c2_i32_69 = arith.constant 2 : i32
    %216 = arith.muli %215, %c2_i32_69 : i32
    %217 = arith.index_cast %216 : i32 to index
    %c32_70 = arith.constant 32 : index
    %218 = vector.load %arg8[%217, %c32_70] : memref<16x64xf32, #tpu.memory_space<vmem>>, vector<2x32xf32>
    tpu.vector_store %arg8[%217, %c32_70], %214 {strides = array<i32>} : memref<16x64xf32, #tpu.memory_space<vmem>>, vector<2x32xf32>,
    %c7_i32_71 = arith.constant 7 : i32
    %c2_i32_72 = arith.constant 2 : i32
    %219 = arith.muli %c7_i32_71, %c2_i32_72 : i32
    %220 = arith.index_cast %219 : i32 to index
    %c0_73 = arith.constant 0 : index
    %221 = vector.load %arg7[%220, %c0_73] : memref<16x256xf32, #tpu.memory_space<vmem>>, vector<2x256xf32>
    %cst_74 = arith.constant dense<0.000000e+00> : vector<2x256xf32>
    %222 = tpu.matmul %209, %7, %cst_74 {dimension_numbers = #tpu.dot_dimension_numbers<[1], [0], [0], [1], [0, 0, 1, 1], [], []>} : vector<2x64xf32>, vector<64x256xf32>, vector<2x256xf32> -> vector<2x256xf32>
    %223 = arith.addf %221, %222 : vector<2x256xf32>
    %224 = vector.extract_strided_slice %223 {offsets = [0, 0], sizes = [2, 192], strides = [1, 1]} : vector<2x256xf32> to vector<2x192xf32>
    %225 = arith.negf %224 : vector<2x192xf32>
    %226 = math.exp %225 : vector<2x192xf32>
    %cst_75 = arith.constant 1.000000e+00 : f32
    %227 = vector.broadcast %cst_75 : f32 to vector<2x192xf32>
    %228 = arith.addf %227, %226 : vector<2x192xf32>
    %229 = arith.divf %227, %228 : vector<2x192xf32>
    %230 = vector.extract_strided_slice %223 {offsets = [0, 192], sizes = [2, 64], strides = [1, 1]} : vector<2x256xf32> to vector<2x64xf32>
    %231 = math.tanh %230 : vector<2x64xf32>
    %232 = vector.extract_strided_slice %229 {offsets = [0, 0], sizes = [2, 64], strides = [1, 1]} : vector<2x192xf32> to vector<2x64xf32>
    %233 = vector.extract_strided_slice %229 {offsets = [0, 64], sizes = [2, 64], strides = [1, 1]} : vector<2x192xf32> to vector<2x64xf32>
    %234 = vector.extract_strided_slice %229 {offsets = [0, 128], sizes = [2, 64], strides = [1, 1]} : vector<2x192xf32> to vector<2x64xf32>
    %235 = arith.mulf %233, %207 : vector<2x64xf32>
    %236 = arith.mulf %232, %231 : vector<2x64xf32>
    %237 = arith.addf %235, %236 : vector<2x64xf32>
    %238 = math.tanh %237 : vector<2x64xf32>
    %239 = arith.mulf %234, %238 : vector<2x64xf32>
    %240 = vector.extract_strided_slice %239 {offsets = [0, 0], sizes = [2, 32], strides = [1, 1]} : vector<2x64xf32> to vector<2x32xf32>
    %c2_i32_76 = arith.constant 2 : i32
    %241 = arith.muli %c7_i32_71, %c2_i32_76 : i32
    %242 = arith.index_cast %241 : i32 to index
    %c0_77 = arith.constant 0 : index
    %243 = vector.load %arg8[%242, %c0_77] : memref<16x64xf32, #tpu.memory_space<vmem>>, vector<2x32xf32>
    tpu.vector_store %arg8[%242, %c0_77], %240 {strides = array<i32>} : memref<16x64xf32, #tpu.memory_space<vmem>>, vector<2x32xf32>,
    %244 = vector.extract_strided_slice %239 {offsets = [0, 32], sizes = [2, 32], strides = [1, 1]} : vector<2x64xf32> to vector<2x32xf32>
    %c7_i32_78 = arith.constant 7 : i32
    %245 = arith.subi %c7_i32_78, %c7_i32_71 : i32
    %c2_i32_79 = arith.constant 2 : i32
    %246 = arith.muli %245, %c2_i32_79 : i32
    %247 = arith.index_cast %246 : i32 to index
    %c32_80 = arith.constant 32 : index
    %248 = vector.load %arg8[%247, %c32_80] : memref<16x64xf32, #tpu.memory_space<vmem>>, vector<2x32xf32>
    tpu.vector_store %arg8[%247, %c32_80], %244 {strides = array<i32>} : memref<16x64xf32, #tpu.memory_space<vmem>>, vector<2x32xf32>,
    %c8_i32 = arith.constant 8 : i32
    %c0_81 = arith.constant 0 : index
    %c0_82 = arith.constant 0 : index
    %249 = vector.load %arg8[%c0_81, %c0_82] : memref<16x64xf32, #tpu.memory_space<vmem>>, vector<16x64xf32>
    %c0_83 = arith.constant 0 : index
    %c0_84 = arith.constant 0 : index
    %250 = vector.load %arg4[%c0_83, %c0_84] : memref<64x16xf32, #tpu.memory_space<vmem>>, vector<64x16xf32>
    %cst_85 = arith.constant dense<0.000000e+00> : vector<16x16xf32>
    %251 = tpu.matmul %249, %250, %cst_85 {dimension_numbers = #tpu.dot_dimension_numbers<[1], [0], [0], [1], [0, 0, 1, 1], [], []>} : vector<16x64xf32>, vector<64x16xf32>, vector<16x16xf32> -> vector<16x16xf32>
    %c0_86 = arith.constant 0 : index
    %c0_87 = arith.constant 0 : index
    %252 = vector.load %arg5[%c0_86, %c0_87] : memref<1x16xf32, #tpu.memory_space<vmem>>, vector<1x16xf32>
    %253 = vector.broadcast %252 : vector<1x16xf32> to vector<16x16xf32>
    %254 = arith.addf %251, %253 : vector<16x16xf32>
    %c0_88 = arith.constant 0 : index
    %c0_89 = arith.constant 0 : index
    %255 = vector.load %arg6[%c0_88, %c0_89] : memref<16x16xf32, #tpu.memory_space<vmem>>, vector<16x16xf32>
    tpu.vector_store %arg6[%c0_88, %c0_89], %254 {strides = array<i32>} : memref<16x16xf32, #tpu.memory_space<vmem>>, vector<16x16xf32>,
    return
  }
}

</mosaic_0001>

<bundles_post_ra>
// kernel: bidirectional_lstm_forward.1
= control target key start
LH: loop header
LB: loop body
LE: loop exit
PB: predicated region body
PF: predicated region fallthrough
CT: control target
= control target key end

     0   :  { %11 = vsyncpa [#allocation5], 0  ;;  %s1887_s0 = inlined_call_operand.vmem [shape: f32[16,32], index: 0, kind: input, shape index: {}]   ;;  %s1888_s1 = inlined_call_operand.hbm [shape: f32[32,256], index: 1, kind: input, shape index: {}]   ;;  %s1889_s2 = inlined_call_operand.vmem [shape: f32[64,256], index: 2, kind: input, shape index: {}]   ;;  %s1890_s3 = inlined_call_operand.vmem [shape: f32[1,256], index: 3, kind: input, shape index: {}]   ;;  %s1891_s4 = inlined_call_operand.vmem [shape: f32[64,16], index: 4, kind: input, shape index: {}]   ;;  %s1892_s5 = inlined_call_operand.vmem [shape: f32[1,16], index: 5, kind: input, shape index: {}]   ;;  %s1893_s6 = inlined_call_operand.hbm [shape: f32[16,16], index: 6, kind: output, shape index: {}]  }
   0x1   :  { %12 = vsyncpa [#allocation6], 0  ;;  %s1594_s21 = smov [#allocation4]   ;;  %s1546_s25 = scalar_lea.hbm %s1888_s1, 1024 }
   0x2   :  { %s20_s22 = sshll.u32 %s1594_s21, 4  ;;  %p1547_p0 = scmp.ne.s32.totalorder %s1888_s1, %s1546_s25  ;;  %s21_s22 = int_to_ptr.vmem [resolvable:$true] %s20_s22 }
   0x3   :  { %p1550_p1 = scmp.lt.u32.totalorder %s1546_s25, %s1888_s1 }
   0x5   :  { %p1552_p2 = pnand %p1550_p1, %p1547_p0 }
   0x7   :  { %1555 = shalt.err (!%p1552_p2)
}
   0x8   :  { %s1556_s30 = scalar_lea.vmem %s21_s22, 1024  ;;  %p1561_p4 = scmp.lt.s32.totalorder %s21_s22, %s21_s22 }
   0x9   :  { %p1557_p3 = scmp.ne.s32.totalorder %s21_s22, %s1556_s30  ;;  %p1562_p5 = scmp.lt.s32.totalorder %s1556_s30, %s1556_s30 }
   0xb   :  { %p1563_p6 = por %p1562_p5, %p1561_p4 }
   0xd   :  { %p1564_p7 = pnand %p1563_p6, %p1557_p3 }
   0xf   :  { %1567 = shalt.err (!%p1564_p7)
}
  0x10   :  { %s1595_s7 = smov 256   ;;  %s1596_s8 = smov 16  }
  0x11   :  { %26 = dma.hbm_to_vmem [thread:$0]  %s1888_s1, 1024, %s21_s22, [#allocation5], %s1595_s7, %s1595_s7, %s1596_s8  }
  0x12   :  { %1590 = dma.done.wait [#allocation5], 1024  }
  0x13   :  { %1591 = vsyncadd [#allocation5], 4294966272  ;;  %v1597_v0 = vmov 0.0   ;;  %v41_v1 = vld [vmem:[#allocation4 + $0x8] sm:$0xff]  ;;  %v43_v2 = vld [vmem:[#allocation4 + $0x18] sm:$0xff]  ;;  %vm60_vm0 = vcmask 261120   ;;  %v50_v38 = vlaneseq }
  0x14   :  { %131 = vmatprep.mubr.f32.mxu0 %v1597_v0  ;;  %234 = vmatprep.mubr.f32.mxu1 %v1597_v0  ;;  %v40_v3 = vld [vmem:[#allocation4] sm:$0xff]  ;;  %v1290_v4 = vpack.c.bf16 %v43_v2, %v41_v1  ;;  %v42_v5 = vld [vmem:[#allocation4 + $0x10] sm:$0xff]  ;;  %v149_v6 = vld [vmem:[%s1889_s2 + $0x8] sm:$0xff]  ;;  %s1598_s20 = smov 64   ;;  %vm273_vm1 = vcmask 254976   ;;  %vm275_vm2 = vcmask 517376  }
  0x15   :  { %v151_v7 = vld [vmem:[%s1889_s2 + $0x18] sm:$0xff]  ;;  %v1292_v8 = vpack.c.bf16 %v42_v5, %v40_v3  ;;  %v148_v10 = vld [vmem:[%s1889_s2] sm:$0xff]  ;;  %v150_v11 = vld [vmem:[%s1889_s2 + $0x10] sm:$0xff]  ;;  %v51_v39 = vshrl.u32 %v50_v38, 7  ;;  %vm166_vm3 = vcmask 523264   ;;  %vm394_vm4 = vcmask 257026  }
  0x16   :  { %v1657_v9 = vpack.c.bf16 %v151_v7, %v149_v6  ;;  %v45_v12 = vld [vmem:[#allocation4 + $0x28] sm:$0xff]  ;;  %1291 = vmatprep.subr.bf16.mxu0 %v1290_v4  ;;  %v1665_v13 = vpack.c.bf16 %v150_v11, %v148_v10  ;;  %v47_v14 = vld [vmem:[#allocation4 + $0x38] sm:$0xff]  ;;  %v44_v15 = vld [vmem:[#allocation4 + $0x20] sm:$0xff]  ;;  %vm396_vm5 = vcmask 519426   ;;  %vm516_vm6 = vcmask 259076   ;;  %s1599_s14 = smov [#allocation7]  }
  0x17   :  { %v46_v16 = vld [vmem:[#allocation4 + $0x30] sm:$0xff]  ;;  %1293 = vmatpush1.bf16.msra.mxu0 %v1292_v8  ;;  %v1294_v17 = vpack.c.bf16 %v47_v14, %v45_v12  ;;  %v153_v19 = vld [vmem:[%s1889_s2 + $0x28] sm:$0xff]  ;;  %v155_v20 = vld [vmem:[%s1889_s2 + $0x38] sm:$0xff]  ;;  %v52_v40 = vsub.s32 0, %v51_v39  ;;  %v56_v42 = vsub.s32 1, %v51_v39  ;;  %vm518_vm7 = vcmask 521476  }
  0x18   :  { %1299 = vmatprep.subr.bf16.mxu1 %v1657_v9  ;;  %v1296_v18 = vpack.c.bf16 %v46_v16, %v44_v15  ;;  %v152_v21 = vld [vmem:[%s1889_s2 + $0x20] sm:$0xff]  ;;  %v1678_v22 = vpack.c.bf16 %v155_v20, %v153_v19  ;;  %v154_v23 = vld [vmem:[%s1889_s2 + $0x30] sm:$0xff]  ;;  %v157_v24 = vld [vmem:[%s1889_s2 + $0x48] sm:$0xff]  ;;  %vm638_vm8 = vcmask 261126   ;;  %vm640_vm9 = vcmask 523526   ;;  %s1221_s1 = sshll.u32 %s1599_s14, 4  ;;  %s1222_s1 = int_to_ptr.vmem [resolvable:$true] %s1221_s1 }
  0x19   :  { %1301 = vmatpush1.bf16.msra.mxu1 %v1665_v13  ;;  %1295 = vmatprep.subr.bf16.mxu0 %v1294_v17  ;;  %v1686_v25 = vpack.c.bf16 %v154_v23, %v152_v21  ;;  %v159_v26 = vld [vmem:[%s1889_s2 + $0x58] sm:$0xff]  ;;  %v156_v27 = vld [vmem:[%s1889_s2 + $0x40] sm:$0xff]  ;;  %v158_v28 = vld [vmem:[%s1889_s2 + $0x50] sm:$0xff]  ;;  %vm1213_vm10 = vcmask 130048   ;;  %s1568_s15 = scalar_lea.vmem %s1222_s1, 256  ;;  %p1573_p9 = scmp.lt.s32.totalorder %s1222_s1, %s1222_s1 }
  0x1a   :  { %1303 = vmatprep.subr.bf16.mxu1 %v1678_v22  ;;  %v1698_v29 = vpack.c.bf16 %v159_v26, %v157_v24  ;;  %v161_v30 = vld [vmem:[%s1889_s2 + $0x68] sm:$0xff]  ;;  %v163_v31 = vld [vmem:[%s1889_s2 + $0x78] sm:$0xff]  ;;  %v38_v32 = vld [vmem:[%s1887_s0] sm:$0xff]  ;;  %v1710_v33 = vpack.c.bf16 %v158_v28, %v156_v27  ;;  %p1569_p8 = scmp.ne.s32.totalorder %s1222_s1, %s1568_s15  ;;  %p1574_p10 = scmp.lt.s32.totalorder %s1568_s15, %s1568_s15 }
  0x1b   :  { %1297 = vmatpush1.bf16.msra.mxu0 %v1296_v18  ;;  %v1714_v34 = vpack.c.bf16 %v163_v31, %v161_v30  ;;  %v160_v35 = vld [vmem:[%s1889_s2 + $0x60] sm:$0xff]  ;;  %v162_v36 = vld [vmem:[%s1889_s2 + $0x70] sm:$0xff]  ;;  %v39_v62 = vld [vmem:[%s1887_s0 + $0x8] sm:$0xff] }
  0x1c   :  { %1315 = vmatprep.subr.bf16.mxu0 %v1657_v9  ;;  %v1726_v37 = vpack.c.bf16 %v162_v36, %v160_v35  ;;  %v48_v41 = vld [vmem:[%s1890_s3] sm:$0x3]  ;;  %p1575_p11 = por %p1574_p10, %p1573_p9 }
  0x1d   :  { %1305 = vmatpush1.bf16.msra.mxu1 %v1686_v25  ;;  %v53_v43 = vrot.slane %v48_v41, %v52_v40  ;;  %v57_v44 = vrot.slane %v48_v41, %v56_v42 }
  0x1e   :  { %1307 = vmatprep.subr.bf16.mxu1 %v1698_v29  ;;  %1233 = vmatmul.mubr.msk.f32.vlgmr.msra.gmra.mrb[0].mxu0 %vm60_vm0, %v38_v32  ;;  %p1576_p12 = pnand %p1575_p11, %p1569_p8 }
  0x1f   :  { %1317 = vmatpush1.bf16.msra.mxu0 %v1665_v13  ;;  %137 = vmatprep.mubr.f32.mxu0 %v1597_v0 }
  0x20   :  { %1319 = vmatprep.subr.bf16.mxu0 %v1678_v22 }
  0x21   :  { %1309 = vmatpush1.bf16.msra.mxu1 %v1710_v33 }
  0x22   :  { %1311 = vmatprep.subr.bf16.mxu1 %v1714_v34  ;;  %1234 = vmatmul.mubr.msk.f32.gmra.mrb[2].mxu0 %vm60_vm0, %v39_v62 }
  0x23   :  { %1321 = vmatpush1.bf16.msra.mxu0 %v1686_v25  ;;  %346 = vmatprep.mubr.f32.mxu0 %v1597_v0 }
  0x24   :  { %1323 = vmatprep.subr.bf16.mxu0 %v1698_v29 }
  0x25   :  { %1313 = vmatpush1.bf16.msra.mxu1 %v1726_v37 }
  0x26   :  { %1331 = vmatprep.subr.bf16.mxu1 %v1657_v9 }
  0x27   :  { %1325 = vmatpush1.bf16.msra.mxu0 %v1710_v33 }
  0x28   :  { %235 = vmatmul.mubr.f32.vlgmr.msra.gmra.mrb[0].mxu1 %v1597_v0  ;;  %1327 = vmatprep.subr.bf16.mxu0 %v1714_v34 }
  0x29   :  { %1333 = vmatpush1.bf16.msra.mxu1 %v1665_v13  ;;  %468 = vmatprep.mubr.f32.mxu1 %v1597_v0 }
  0x2a   :  { %1335 = vmatprep.subr.bf16.mxu1 %v1678_v22 }
  0x2b   :  { %1329 = vmatpush1.bf16.msra.mxu0 %v1726_v37 }
  0x2c   :  { %1347 = vmatprep.subr.bf16.mxu0 %v1657_v9 }
  0x2d   :  { %1337 = vmatpush1.bf16.msra.mxu1 %v1686_v25 }
  0x2e   :  { %1339 = vmatprep.subr.bf16.mxu1 %v1698_v29 }
  0x31   :  { %1341 = vmatpush1.bf16.msra.mxu1 %v1710_v33 }
  0x32   :  { %1343 = vmatprep.subr.bf16.mxu1 %v1714_v34 }
  0x35   :  { %1345 = vmatpush1.bf16.msra.mxu1 %v1726_v37 }
  0x36   :  { %1363 = vmatprep.subr.bf16.mxu1 %v1657_v9 }
  0xf1   :  { %v133_v45 = vpop.f32.mrb[0].mxu0 }
  0xf2   :  { %v134_v46 = vadd.f32 %v133_v45, %v53_v43  ;;  %v135_v47 = vpop.f32.mrb[1].mxu0 }
  0xf3   :  { %v136_v48 = vadd.f32 %v135_v47, %v57_v44 }
  0xf4   :  { %144 = vst [vmem:[#allocation2] sm:$0xff] %v134_v46 }
  0xf5   :  { %145 = vst [vmem:[#allocation2 + $0x8] sm:$0xff] %v136_v48  ;;  %v139_v5 = vpop.f32.mrb[2].mxu0 }
  0xf6   :  { %v140_v6 = vadd.f32 %v139_v5, %v53_v43  ;;  %v141_v7 = vpop.f32.mrb[3].mxu0 }
  0xf7   :  { %v142_v8 = vadd.f32 %v141_v7, %v57_v44 }
  0xf8   :  { %146 = vst [vmem:[#allocation2 + $0x10] sm:$0xff] %v140_v6 }
  0xf9   :  { %147 = vst [vmem:[#allocation2 + $0x18] sm:$0xff] %v142_v8 }
  0xfb   :  { %v236_v49 = vpop.f32.mrb[0].mxu1  ;;  %v164_v54 = vld [vmem:[#allocation2] sm:$0x3]  ;;  %v277_v24 = vld [vmem:[#allocation2] sm:$0xc] }
  0xfc   :  { %v238_v50 = vpop.f32.mrb[1].mxu1  ;;  %v165_v51 = vld [vmem:[#allocation2 + $0x8] sm:$0x3]  ;;  %v241_v55 = vadd.f32 %v236_v49, %v164_v54  ;;  %v278_v19 = vld [vmem:[#allocation2 + $0x8] sm:$0xc] }
  0xfd   :  { %v242_v52 = vadd.f32 %v238_v50, %v165_v51 }
  0xfe   :  { %v1235_v56 = vmul.f32 -1.442695, %v241_v55 }
  0xff   :  { %1450 = vtanh.f32 %v242_v52  ;;  %v1236_v4 = vmul.f32 -1.442695, %v242_v52  ;;  %v399_v52 = vld [vmem:[#allocation2 + $0x8] sm:$0x30] }
 0x100   :  { %1452 = vpow2.f32 %v1235_v56  ;;  %v398_v56 = vld [vmem:[#allocation2] sm:$0x30] }
 0x109   :  { %v1451_v53 = vpop.eup %1450 }
 0x10a   :  { %258 = vrot.lane.b32.xlu0 %v1451_v53, %s1598_s20  ;;  %v1453_v57 = vpop.eup %1452 }
 0x10b   :  { %v249_v58 = vadd.f32 1.0, %v1453_v57 }
 0x10d   :  { %1454 = vrcp.f32 %v249_v58 }
 0x117   :  { %v1455_v59 = vpop.eup %1454 }
 0x118   :  { %v256_v63 = vmul.f32 0.0, %v1455_v59 }
 0x17c   :  { %v259_v60 = vpop.permute.xlu0 %258 }
 0x17d   :  { %v261_v61 = vmul.f32 %v1455_v59, %v259_v60 }
 0x17f   :  { %263 = vrot.lane.b32.xlu0 %v261_v61, %s1598_s20 }
 0x1f1   :  { %v264_v1 = vpop.permute.xlu0 %263 }
 0x1f2   :  { %v266_v2 = vadd.f32 %v264_v1, %v256_v63 }
 0x1f4   :  { %1456 = vtanh.f32 %v266_v2  ;;  %v375_v36 = vrot.slane %v266_v2, 6 }
 0x1f5   :  { %1458 = vpow2.f32 %v1236_v4 }
 0x1fe   :  { %v1457_v3 = vpop.eup %1456 }
 0x1ff   :  { %269 = vrot.lane.b32.xlu1 %v1457_v3, %s1598_s20  ;;  %v1459_v10 = vpop.eup %1458 }
 0x200   :  { %v250_v11 = vadd.f32 1.0, %v1459_v10 }
 0x202   :  { %1460 = vrcp.f32 %v250_v11 }
 0x20c   :  { %v1461_v12 = vpop.eup %1460 }
 0x271   :  { %v270_v14 = vpop.permute.xlu1 %269 }
 0x272   :  { %v272_v15 = vmul.f32 %v1461_v12, %v270_v14 }
 0x274   :  { %274 = vst.msk [vmem:[#allocation3] sm:$0x3] %vm273_vm1, %v272_v15  ;;  %1237 = vmatmul.mubr.msk.f32.vlgmr.msra.gmra.mrb[4].mxu0 %vm166_vm3, %v272_v15 }
 0x275   :  { %276 = vst.msk [vmem:[#allocation3 + $0xe] sm:$0x3] %vm275_vm2, %v272_v15  ;;  %1349 = vmatpush1.bf16.msra.mxu0 %v1665_v13  ;;  %590 = vmatprep.mubr.f32.mxu0 %v1597_v0 }
 0x276   :  { %1351 = vmatprep.subr.bf16.mxu0 %v1678_v22 }
 0x279   :  { %1353 = vmatpush1.bf16.msra.mxu0 %v1686_v25 }
 0x27a   :  { %1355 = vmatprep.subr.bf16.mxu0 %v1698_v29 }
 0x27d   :  { %1357 = vmatpush1.bf16.msra.mxu0 %v1710_v33 }
 0x27e   :  { %1359 = vmatprep.subr.bf16.mxu0 %v1714_v34 }
 0x281   :  { %1361 = vmatpush1.bf16.msra.mxu0 %v1726_v37 }
 0x282   :  { %1379 = vmatprep.subr.bf16.mxu0 %v1657_v9 }
 0x347   :  { %v348_v16 = vpop.f32.mrb[4].mxu0 }
 0x348   :  { %v350_v17 = vpop.f32.mrb[5].mxu0  ;;  %v355_v23 = vrot.slane %v348_v16, 6 }
 0x349   :  { %v356_v18 = vrot.slane %v350_v17, 6 }
 0x34a   :  { %v359_v26 = vadd.f32 %v355_v23, %v277_v24  ;;  %v520_v23 = vld [vmem:[#allocation2] sm:$0xc0] }
 0x34b   :  { %v360_v20 = vadd.f32 %v356_v18, %v278_v19  ;;  %v521_v18 = vld [vmem:[#allocation2 + $0x8] sm:$0xc0] }
 0x34c   :  { %v1238_v27 = vmul.f32 -1.442695, %v359_v26 }
 0x34d   :  { %1462 = vtanh.f32 %v360_v20  ;;  %v1239_v42 = vmul.f32 -1.442695, %v360_v20 }
 0x34e   :  { %1464 = vpow2.f32 %v1238_v27 }
 0x357   :  { %v1463_v21 = vpop.eup %1462 }
 0x358   :  { %379 = vrot.lane.b32.xlu1 %v1463_v21, %s1598_s20  ;;  %v1465_v28 = vpop.eup %1464 }
 0x359   :  { %v367_v30 = vadd.f32 1.0, %v1465_v28 }
 0x35b   :  { %1466 = vrcp.f32 %v367_v30 }
 0x365   :  { %v1467_v31 = vpop.eup %1466 }
 0x366   :  { %v377_v38 = vmul.f32 %v1467_v31, %v375_v36 }
 0x3ca   :  { %v380_v32 = vpop.permute.xlu1 %379 }
 0x3cb   :  { %v382_v35 = vmul.f32 %v1467_v31, %v380_v32 }
 0x3cd   :  { %384 = vrot.lane.b32.xlu0 %v382_v35, %s1598_s20 }
 0x43f   :  { %v385_v39 = vpop.permute.xlu0 %384 }
 0x440   :  { %v387_v40 = vadd.f32 %v385_v39, %v377_v38 }
 0x442   :  { %1468 = vtanh.f32 %v387_v40  ;;  %v497_v1 = vrot.slane %v387_v40, 6 }
 0x443   :  { %1470 = vpow2.f32 %v1239_v42 }
 0x44c   :  { %v1469_v41 = vpop.eup %1468 }
 0x44d   :  { %390 = vrot.lane.b32.xlu1 %v1469_v41, %s1598_s20  ;;  %v1471_v43 = vpop.eup %1470 }
 0x44e   :  { %v368_v44 = vadd.f32 1.0, %v1471_v43 }
 0x450   :  { %1472 = vrcp.f32 %v368_v44 }
 0x45a   :  { %v1473_v45 = vpop.eup %1472 }
 0x4bf   :  { %v391_v46 = vpop.permute.xlu1 %390 }
 0x4c0   :  { %v393_v47 = vmul.f32 %v1473_v45, %v391_v46 }
 0x4c2   :  { %395 = vst.msk [vmem:[#allocation3] sm:$0xc] %vm394_vm4, %v393_v47  ;;  %v401_v48 = vrot.slane %v393_v47, 2 }
 0x4c3   :  { %397 = vst.msk [vmem:[#allocation3 + $0xa] sm:$0xc] %vm396_vm5, %v393_v47 }
 0x4c4   :  { %1240 = vmatmul.mubr.msk.f32.vlgmr.msra.gmra.mrb[2].mxu1 %vm166_vm3, %v401_v48  ;;  %v643_v48 = vld [vmem:[#allocation2 + $0x18] sm:$0x3] }
 0x4c5   :  { %1365 = vmatpush1.bf16.msra.mxu1 %v1665_v13  ;;  %712 = vmatprep.mubr.f32.mxu1 %v1597_v0 }
 0x4c6   :  { %1367 = vmatprep.subr.bf16.mxu1 %v1678_v22 }
 0x4c9   :  { %1369 = vmatpush1.bf16.msra.mxu1 %v1686_v25 }
 0x4ca   :  { %1371 = vmatprep.subr.bf16.mxu1 %v1698_v29 }
 0x4cd   :  { %1373 = vmatpush1.bf16.msra.mxu1 %v1710_v33 }
 0x4ce   :  { %1375 = vmatprep.subr.bf16.mxu1 %v1714_v34 }
 0x4d1   :  { %1377 = vmatpush1.bf16.msra.mxu1 %v1726_v37 }
 0x4d2   :  { %1395 = vmatprep.subr.bf16.mxu1 %v1657_v9 }
 0x597   :  { %v470_v49 = vpop.f32.mrb[2].mxu1 }
 0x598   :  { %v472_v50 = vpop.f32.mrb[3].mxu1  ;;  %v477_v55 = vrot.slane %v470_v49, 4 }
 0x599   :  { %v478_v51 = vrot.slane %v472_v50, 4 }
 0x59a   :  { %v481_v57 = vadd.f32 %v477_v55, %v398_v56 }
 0x59b   :  { %v482_v53 = vadd.f32 %v478_v51, %v399_v52  ;;  %v642_v52 = vld [vmem:[#allocation2 + $0x10] sm:$0x3] }
 0x59c   :  { %v1241_v58 = vmul.f32 -1.442695, %v481_v57 }
 0x59d   :  { %1474 = vtanh.f32 %v482_v53  ;;  %v1242_v6 = vmul.f32 -1.442695, %v482_v53 }
 0x59e   :  { %1476 = vpow2.f32 %v1241_v58 }
 0x5a7   :  { %v1475_v54 = vpop.eup %1474 }
 0x5a8   :  { %501 = vrot.lane.b32.xlu0 %v1475_v54, %s1598_s20  ;;  %v1477_v59 = vpop.eup %1476 }
 0x5a9   :  { %v489_v60 = vadd.f32 1.0, %v1477_v59 }
 0x5ab   :  { %1478 = vrcp.f32 %v489_v60 }
 0x5b5   :  { %v1479_v61 = vpop.eup %1478 }
 0x5b6   :  { %v499_v2 = vmul.f32 %v1479_v61, %v497_v1 }
 0x61a   :  { %v502_v62 = vpop.permute.xlu0 %501 }
 0x61b   :  { %v504_v63 = vmul.f32 %v1479_v61, %v502_v62 }
 0x61d   :  { %506 = vrot.lane.b32.xlu1 %v504_v63, %s1598_s20 }
 0x68f   :  { %v507_v3 = vpop.permute.xlu1 %506 }
 0x690   :  { %v509_v4 = vadd.f32 %v507_v3, %v499_v2 }
 0x692   :  { %1480 = vtanh.f32 %v509_v4  ;;  %v619_v32 = vrot.slane %v509_v4, 6 }
 0x693   :  { %1482 = vpow2.f32 %v1242_v6 }
 0x69c   :  { %v1481_v5 = vpop.eup %1480 }
 0x69d   :  { %512 = vrot.lane.b32.xlu0 %v1481_v5, %s1598_s20  ;;  %v1483_v7 = vpop.eup %1482 }
 0x69e   :  { %v490_v8 = vadd.f32 1.0, %v1483_v7 }
 0x6a0   :  { %1484 = vrcp.f32 %v490_v8 }
 0x6aa   :  { %v1485_v10 = vpop.eup %1484 }
 0x70f   :  { %v513_v11 = vpop.permute.xlu0 %512 }
 0x710   :  { %v515_v12 = vmul.f32 %v1485_v10, %v513_v11 }
 0x712   :  { %517 = vst.msk [vmem:[#allocation3] sm:$0x30] %vm516_vm6, %v515_v12  ;;  %v523_v14 = vrot.slane %v515_v12, 4 }
 0x713   :  { %519 = vst.msk [vmem:[#allocation3 + $0x6] sm:$0x30] %vm518_vm7, %v515_v12  ;;  %v757_v12 = vld [vmem:[#allocation2 + $0x18] sm:$0xc] }
 0x714   :  { %1243 = vmatmul.mubr.msk.f32.vlgmr.msra.gmra.mrb[6].mxu0 %vm166_vm3, %v523_v14 }
 0x715   :  { %1381 = vmatpush1.bf16.msra.mxu0 %v1665_v13  ;;  %825 = vmatprep.mubr.f32.mxu0 %v1597_v0 }
 0x716   :  { %1383 = vmatprep.subr.bf16.mxu0 %v1678_v22 }
 0x719   :  { %1385 = vmatpush1.bf16.msra.mxu0 %v1686_v25 }
 0x71a   :  { %1387 = vmatprep.subr.bf16.mxu0 %v1698_v29 }
 0x71d   :  { %1389 = vmatpush1.bf16.msra.mxu0 %v1710_v33 }
 0x71e   :  { %1391 = vmatprep.subr.bf16.mxu0 %v1714_v34 }
 0x721   :  { %1393 = vmatpush1.bf16.msra.mxu0 %v1726_v37 }
 0x722   :  { %1411 = vmatprep.subr.bf16.mxu0 %v1657_v9 }
 0x7e7   :  { %v592_v15 = vpop.f32.mrb[6].mxu0 }
 0x7e8   :  { %v594_v16 = vpop.f32.mrb[7].mxu0  ;;  %v599_v21 = vrot.slane %v592_v15, 2 }
 0x7e9   :  { %v600_v17 = vrot.slane %v594_v16, 2 }
 0x7ea   :  { %v603_v24 = vadd.f32 %v599_v21, %v520_v23 }
 0x7eb   :  { %v604_v19 = vadd.f32 %v600_v17, %v521_v18 }
 0x7ec   :  { %v1244_v26 = vmul.f32 -1.442695, %v603_v24 }
 0x7ed   :  { %1486 = vtanh.f32 %v604_v19  ;;  %v1245_v40 = vmul.f32 -1.442695, %v604_v19 }
 0x7ee   :  { %1488 = vpow2.f32 %v1244_v26 }
 0x7f7   :  { %v1487_v20 = vpop.eup %1486 }
 0x7f8   :  { %623 = vrot.lane.b32.xlu1 %v1487_v20, %s1598_s20  ;;  %v1489_v27 = vpop.eup %1488 }
 0x7f9   :  { %v611_v28 = vadd.f32 1.0, %v1489_v27 }
 0x7fb   :  { %1490 = vrcp.f32 %v611_v28 }
 0x805   :  { %v1491_v30 = vpop.eup %1490 }
 0x806   :  { %v621_v35 = vmul.f32 %v1491_v30, %v619_v32 }
 0x86a   :  { %v624_v31 = vpop.permute.xlu1 %623 }
 0x86b   :  { %v626_v9 = vmul.f32 %v1491_v30, %v624_v31 }
 0x86d   :  { %628 = vrot.lane.b32.xlu0 %v626_v9, %s1598_s20 }
 0x8df   :  { %v629_v36 = vpop.permute.xlu0 %628 }
 0x8e0   :  { %v631_v38 = vadd.f32 %v629_v36, %v621_v35  ;;  %v876_v36 = vld [vmem:[#allocation2 + $0x18] sm:$0x30] }
 0x8e2   :  { %1492 = vtanh.f32 %v631_v38  ;;  %v735_v60 = vrot.slane %v631_v38, 6 }
 0x8e3   :  { %1494 = vpow2.f32 %v1245_v40 }
 0x8ec   :  { %v1493_v39 = vpop.eup %1492 }
 0x8ed   :  { %634 = vrot.lane.b32.xlu1 %v1493_v39, %s1598_s20  ;;  %v1495_v41 = vpop.eup %1494 }
 0x8ee   :  { %v612_v42 = vadd.f32 1.0, %v1495_v41  ;;  %v875_v41 = vld [vmem:[#allocation2 + $0x10] sm:$0x30] }
 0x8f0   :  { %1496 = vrcp.f32 %v612_v42 }
 0x8fa   :  { %v1497_v43 = vpop.eup %1496 }
 0x95f   :  { %v635_v44 = vpop.permute.xlu1 %634 }
 0x960   :  { %v637_v45 = vmul.f32 %v1497_v43, %v635_v44 }
 0x962   :  { %639 = vst.msk [vmem:[#allocation3] sm:$0xc0] %vm638_vm8, %v637_v45  ;;  %v645_v46 = vrot.slane %v637_v45, 6 }
 0x963   :  { %641 = vst.msk [vmem:[#allocation3 + $0x2] sm:$0xc0] %vm640_vm9, %v637_v45 }
 0x964   :  { %1246 = vmatmul.mubr.msk.f32.vlgmr.msra.gmra.mrb[4].mxu1 %vm166_vm3, %v645_v46 }
 0x965   :  { %1397 = vmatpush1.bf16.msra.mxu1 %v1665_v13  ;;  %945 = vmatprep.mubr.f32.mxu1 %v1597_v0 }
 0x966   :  { %1399 = vmatprep.subr.bf16.mxu1 %v1678_v22 }
 0x969   :  { %1401 = vmatpush1.bf16.msra.mxu1 %v1686_v25 }
 0x96a   :  { %1403 = vmatprep.subr.bf16.mxu1 %v1698_v29 }
 0x96d   :  { %1405 = vmatpush1.bf16.msra.mxu1 %v1710_v33 }
 0x96e   :  { %1407 = vmatprep.subr.bf16.mxu1 %v1714_v34 }
 0x971   :  { %1409 = vmatpush1.bf16.msra.mxu1 %v1726_v37 }
 0xa37   :  { %v714_v47 = vpop.f32.mrb[4].mxu1 }
 0xa38   :  { %v716_v49 = vpop.f32.mrb[5].mxu1  ;;  %v719_v53 = vadd.f32 %v714_v47, %v642_v52 }
 0xa39   :  { %v720_v50 = vadd.f32 %v716_v49, %v643_v48 }
 0xa3a   :  { %v1247_v54 = vmul.f32 -1.442695, %v719_v53 }
 0xa3b   :  { %1498 = vtanh.f32 %v720_v50  ;;  %v1248_v2 = vmul.f32 -1.442695, %v720_v50 }
 0xa3c   :  { %1500 = vpow2.f32 %v1247_v54 }
 0xa45   :  { %v1499_v51 = vpop.eup %1498 }
 0xa46   :  { %739 = vrot.lane.b32.xlu0 %v1499_v51, %s1598_s20  ;;  %v1501_v55 = vpop.eup %1500 }
 0xa47   :  { %v727_v56 = vadd.f32 1.0, %v1501_v55 }
 0xa49   :  { %1502 = vrcp.f32 %v727_v56 }
 0xa53   :  { %v1503_v57 = vpop.eup %1502 }
 0xa54   :  { %v737_v61 = vmul.f32 %v1503_v57, %v735_v60 }
 0xab8   :  { %v740_v58 = vpop.permute.xlu0 %739 }
 0xab9   :  { %v742_v59 = vmul.f32 %v1503_v57, %v740_v58 }
 0xabb   :  { %744 = vrot.lane.b32.xlu1 %v742_v59, %s1598_s20 }
 0xb2d   :  { %v745_v62 = vpop.permute.xlu1 %744 }
 0xb2e   :  { %v747_v63 = vadd.f32 %v745_v62, %v737_v61 }
 0xb30   :  { %1504 = vtanh.f32 %v747_v63  ;;  %v854_v17 = vrot.slane %v747_v63, 6 }
 0xb31   :  { %1506 = vpow2.f32 %v1248_v2 }
 0xb3a   :  { %v1505_v1 = vpop.eup %1504 }
 0xb3b   :  { %750 = vrot.lane.b32.xlu0 %v1505_v1, %s1598_s20  ;;  %v1507_v3 = vpop.eup %1506  ;;  %v996_v1 = vld [vmem:[#allocation2 + $0x18] sm:$0xc0] }
 0xb3c   :  { %v728_v4 = vadd.f32 1.0, %v1507_v3 }
 0xb3e   :  { %1508 = vrcp.f32 %v728_v4 }
 0xb48   :  { %v1509_v5 = vpop.eup %1508 }
 0xbad   :  { %v751_v6 = vpop.permute.xlu0 %750 }
 0xbae   :  { %v753_v7 = vmul.f32 %v1509_v5, %v751_v6  ;;  %v995_v5 = vld [vmem:[#allocation2 + $0x10] sm:$0xc0] }
 0xbb0   :  { %754 = vst.msk [vmem:[#allocation3 + $0x8] sm:$0x3] %vm273_vm1, %v753_v7  ;;  %1249 = vmatmul.mubr.msk.f32.vlgmr.msra.gmra.mrb[8].mxu0 %vm166_vm3, %v753_v7 }
 0xbb1   :  { %755 = vst.msk [vmem:[#allocation3 + $0x6] sm:$0x3] %vm275_vm2, %v753_v7  ;;  %1413 = vmatpush1.bf16.msra.mxu0 %v1665_v13  ;;  %1065 = vmatprep.mubr.f32.mxu0 %v1597_v0 }
 0xbb2   :  { %1415 = vmatprep.subr.bf16.mxu0 %v1678_v22  ;;  %v756_v22 = vld [vmem:[#allocation2 + $0x10] sm:$0xc] }
 0xbb5   :  { %1417 = vmatpush1.bf16.msra.mxu0 %v1686_v25 }
 0xbb6   :  { %1419 = vmatprep.subr.bf16.mxu0 %v1698_v29 }
 0xbb9   :  { %1421 = vmatpush1.bf16.msra.mxu0 %v1710_v33 }
 0xbba   :  { %1423 = vmatprep.subr.bf16.mxu0 %v1714_v34 }
 0xbbd   :  { %1425 = vmatpush1.bf16.msra.mxu0 %v1726_v37 }
 0xc83   :  { %v827_v8 = vpop.f32.mrb[8].mxu0 }
 0xc84   :  { %v829_v10 = vpop.f32.mrb[9].mxu0  ;;  %v834_v0 = vrot.slane %v827_v8, 6 }
 0xc85   :  { %v835_v11 = vrot.slane %v829_v10, 6 }
 0xc86   :  { %v838_v25 = vadd.f32 %v834_v0, %v756_v22  ;;  %v1118_v0 = vld [vmem:[%s1891_s4 + $0x8] sm:$0xff]  ;;  %v1119_v22 = vld [vmem:[%s1891_s4 + $0x10] sm:$0xff] }
 0xc87   :  { %v839_v14 = vadd.f32 %v835_v11, %v757_v12 }
 0xc88   :  { %v1250_v15 = vmul.f32 -1.442695, %v838_v25 }
 0xc89   :  { %1510 = vtanh.f32 %v839_v14  ;;  %v1251_v23 = vmul.f32 -1.442695, %v839_v14 }
 0xc8a   :  { %1512 = vpow2.f32 %v1250_v15  ;;  %v1120_v15 = vld [vmem:[%s1891_s4 + $0x18] sm:$0xff] }
 0xc93   :  { %v1511_v13 = vpop.eup %1510 }
 0xc94   :  { %858 = vrot.lane.b32.xlu1 %v1511_v13, %s1598_s20  ;;  %v1513_v29 = vpop.eup %1512  ;;  %v1117_v13 = vld [vmem:[%s1891_s4] sm:$0xff] }
 0xc95   :  { %v846_v33 = vadd.f32 1.0, %v1513_v29  ;;  %v1426_v25 = vpack.c.bf16 %v1118_v0, %v1117_v13  ;;  %v1430_v29 = vpack.c.bf16 %v1120_v15, %v1119_v22 }
 0xc97   :  { %1514 = vrcp.f32 %v846_v33  ;;  %1427 = vmatprep.subr.bf16.mxu1 %v1426_v25 }
 0xca1   :  { %v1515_v34 = vpop.eup %1514 }
 0xca2   :  { %v856_v18 = vmul.f32 %v1515_v34, %v854_v17  ;;  %v1121_v17 = vld [vmem:[%s1891_s4 + $0x20] sm:$0xff] }
 0xd06   :  { %v859_v16 = vpop.permute.xlu1 %858 }
 0xd07   :  { %v861_v37 = vmul.f32 %v1515_v34, %v859_v16 }
 0xd09   :  { %863 = vrot.lane.b32.xlu0 %v861_v37, %s1598_s20 }
 0xd7b   :  { %v864_v19 = vpop.permute.xlu0 %863 }
 0xd7c   :  { %v866_v20 = vadd.f32 %v864_v19, %v856_v18  ;;  %v1122_v18 = vld [vmem:[%s1891_s4 + $0x28] sm:$0xff]  ;;  %v1123_v19 = vld [vmem:[%s1891_s4 + $0x30] sm:$0xff] }
 0xd7e   :  { %1516 = vtanh.f32 %v866_v20  ;;  %v974_v49 = vrot.slane %v866_v20, 6  ;;  %v1434_v20 = vpack.c.bf16 %v1122_v18, %v1121_v17 }
 0xd7f   :  { %1518 = vpow2.f32 %v1251_v23 }
 0xd88   :  { %v1517_v21 = vpop.eup %1516 }
 0xd89   :  { %869 = vrot.lane.b32.xlu1 %v1517_v21, %s1598_s20  ;;  %v1519_v24 = vpop.eup %1518  ;;  %v1124_v21 = vld [vmem:[%s1891_s4 + $0x38] sm:$0xff] }
 0xd8a   :  { %v847_v26 = vadd.f32 1.0, %v1519_v24  ;;  %v1438_v23 = vpack.c.bf16 %v1124_v21, %v1123_v19 }
 0xd8c   :  { %1520 = vrcp.f32 %v847_v26 }
 0xd96   :  { %v1521_v27 = vpop.eup %1520 }
 0xdfb   :  { %v870_v28 = vpop.permute.xlu1 %869 }
 0xdfc   :  { %v872_v30 = vmul.f32 %v1521_v27, %v870_v28 }
 0xdfe   :  { %873 = vst.msk [vmem:[#allocation3 + $0x8] sm:$0xc] %vm394_vm4, %v872_v30  ;;  %v878_v31 = vrot.slane %v872_v30, 2 }
 0xdff   :  { %874 = vst.msk [vmem:[#allocation3 + $0x2] sm:$0xc] %vm396_vm5, %v872_v30 }
 0xe00   :  { %1252 = vmatmul.mubr.msk.f32.vlgmr.msra.gmra.mrb[6].mxu1 %vm166_vm3, %v878_v31 }
 0xe01   :  { %1429 = vmatpush3.bf16.msra.mxu1 %v1426_v25 }
 0xe02   :  { %1431 = vmatprep.subr.bf16.mxu1 %v1430_v29 }
 0xe05   :  { %1433 = vmatpush3.bf16.msra.mxu1 %v1430_v29 }
 0xe06   :  { %1435 = vmatprep.subr.bf16.mxu1 %v1434_v20 }
 0xe09   :  { %1437 = vmatpush3.bf16.msra.mxu1 %v1434_v20 }
 0xe0a   :  { %1439 = vmatprep.subr.bf16.mxu1 %v1438_v23 }
 0xe0d   :  { %1441 = vmatpush3.bf16.msra.mxu1 %v1438_v23 }
 0xed3   :  { %v947_v9 = vpop.f32.mrb[6].mxu1 }
 0xed4   :  { %v949_v32 = vpop.f32.mrb[7].mxu1  ;;  %v954_v40 = vrot.slane %v947_v9, 4 }
 0xed5   :  { %v955_v35 = vrot.slane %v949_v32, 4 }
 0xed6   :  { %v958_v42 = vadd.f32 %v954_v40, %v875_v41 }
 0xed7   :  { %v959_v38 = vadd.f32 %v955_v35, %v876_v36  ;;  %v1258_v36 = vld [vmem:[%s1892_s5] ss:$0 sm:$0xff] }
 0xed8   :  { %v1253_v43 = vmul.f32 -1.442695, %v958_v42 }
 0xed9   :  { %1522 = vtanh.f32 %v959_v38  ;;  %v1254_v54 = vmul.f32 -1.442695, %v959_v38 }
 0xeda   :  { %1524 = vpow2.f32 %v1253_v43 }
 0xee3   :  { %v1523_v39 = vpop.eup %1522 }
 0xee4   :  { %978 = vrot.lane.b32.xlu0 %v1523_v39, %s1598_s20  ;;  %v1525_v44 = vpop.eup %1524 }
 0xee5   :  { %v966_v45 = vadd.f32 1.0, %v1525_v44 }
 0xee7   :  { %1526 = vrcp.f32 %v966_v45 }
 0xef1   :  { %v1527_v46 = vpop.eup %1526 }
 0xef2   :  { %v976_v50 = vmul.f32 %v1527_v46, %v974_v49 }
 0xf56   :  { %v979_v47 = vpop.permute.xlu0 %978 }
 0xf57   :  { %v981_v48 = vmul.f32 %v1527_v46, %v979_v47 }
 0xf59   :  { %983 = vrot.lane.b32.xlu1 %v981_v48, %s1598_s20 }
 0xfcb   :  { %v984_v51 = vpop.permute.xlu1 %983 }
 0xfcc   :  { %v986_v52 = vadd.f32 %v984_v51, %v976_v50 }
 0xfce   :  { %1528 = vtanh.f32 %v986_v52  ;;  %v1094_v33 = vrot.slane %v986_v52, 6 }
 0xfcf   :  { %1530 = vpow2.f32 %v1254_v54 }
 0xfd8   :  { %v1529_v53 = vpop.eup %1528 }
 0xfd9   :  { %989 = vrot.lane.b32.xlu0 %v1529_v53, %s1598_s20  ;;  %v1531_v55 = vpop.eup %1530 }
 0xfda   :  { %v967_v56 = vadd.f32 1.0, %v1531_v55 }
 0xfdc   :  { %1532 = vrcp.f32 %v967_v56 }
 0xfe6   :  { %v1533_v57 = vpop.eup %1532 }
0x104b   :  { %v990_v58 = vpop.permute.xlu0 %989 }
0x104c   :  { %v992_v59 = vmul.f32 %v1533_v57, %v990_v58 }
0x104e   :  { %993 = vst.msk [vmem:[#allocation3 + $0x8] sm:$0x30] %vm516_vm6, %v992_v59  ;;  %v998_v60 = vrot.slane %v992_v59, 4 }
0x104f   :  { %994 = vst.msk [vmem:[#allocation3 - $0x2] sm:$0x30] %vm518_vm7, %v992_v59 }
0x1050   :  { %1255 = vmatmul.mubr.msk.f32.vlgmr.msra.gmra.mrb[10].mxu0 %vm166_vm3, %v998_v60 }
0x1123   :  { %v1067_v61 = vpop.f32.mrb[10].mxu0 }
0x1124   :  { %v1069_v62 = vpop.f32.mrb[11].mxu0  ;;  %v1074_v4 = vrot.slane %v1067_v61, 2 }
0x1125   :  { %v1075_v63 = vrot.slane %v1069_v62, 2 }
0x1126   :  { %v1078_v6 = vadd.f32 %v1074_v4, %v995_v5 }
0x1127   :  { %v1079_v2 = vadd.f32 %v1075_v63, %v996_v1 }
0x1128   :  { %v1256_v7 = vmul.f32 -1.442695, %v1078_v6 }
0x1129   :  { %1534 = vtanh.f32 %v1079_v2  ;;  %v1257_v26 = vmul.f32 -1.442695, %v1079_v2 }
0x112a   :  { %1536 = vpow2.f32 %v1256_v7 }
0x1133   :  { %v1535_v3 = vpop.eup %1534 }
0x1134   :  { %1098 = vrot.lane.b32.xlu1 %v1535_v3, %s1598_s20  ;;  %v1537_v8 = vpop.eup %1536 }
0x1135   :  { %v1086_v10 = vadd.f32 1.0, %v1537_v8 }
0x1137   :  { %1538 = vrcp.f32 %v1086_v10 }
0x1141   :  { %v1539_v11 = vpop.eup %1538 }
0x1142   :  { %v1096_v34 = vmul.f32 %v1539_v11, %v1094_v33 }
0x11a6   :  { %v1099_v12 = vpop.permute.xlu1 %1098 }
0x11a7   :  { %v1101_v14 = vmul.f32 %v1539_v11, %v1099_v12 }
0x11a9   :  { %1103 = vrot.lane.b32.xlu0 %v1101_v14, %s1598_s20 }
0x121b   :  { %v1104_v16 = vpop.permute.xlu0 %1103 }
0x121c   :  { %v1106_v37 = vadd.f32 %v1104_v16, %v1096_v34 }
0x121e   :  { %1540 = vtanh.f32 %v1106_v37 }
0x121f   :  { %1542 = vpow2.f32 %v1257_v26 }
0x1228   :  { %v1541_v24 = vpop.eup %1540 }
0x1229   :  { %1109 = vrot.lane.b32.xlu1 %v1541_v24, %s1598_s20  ;;  %v1543_v27 = vpop.eup %1542 }
0x122a   :  { %v1087_v28 = vadd.f32 1.0, %v1543_v27 }
0x122c   :  { %1544 = vrcp.f32 %v1087_v28 }
0x1236   :  { %v1545_v30 = vpop.eup %1544 }
0x129b   :  { %v1110_v31 = vpop.permute.xlu1 %1109 }
0x129c   :  { %v1112_v9 = vmul.f32 %v1545_v30, %v1110_v31 }
0x129e   :  { %1113 = vst.msk [vmem:[#allocation3 + $0x8] sm:$0xc0] %vm638_vm8, %v1112_v9 }
0x129f   :  { %1114 = vst.msk [vmem:[#allocation3 - $0x6] sm:$0xc0] %vm640_vm9, %v1112_v9 }
0x12a5   :  { %v1116_v35 = vld [vmem:[#allocation3 + $0x8] sm:$0xff] }
0x12a6   :  { %v1115_v32 = vld [vmem:[#allocation3] sm:$0xff] }
0x12a7   :  { %1287 = vmatprep.mubr.msk.f32.mxu1 %vm166_vm3, %v1115_v32 }
0x12a8   :  { %1288 = vmatmul.mubr.msk.f32.vlgmr.msra.gmra.mrb[8].mxu1 %vm166_vm3, %v1116_v35 }
0x137b   :  { %v1289_v38 = vpop.f32.mrb[8].mxu1 }
0x137c   :  { %v1210_v39 = vadd.f32 %v1289_v38, %v1258_v36  ;;  %v1204_v40 = vpop.f32.mrb[9].mxu1 }
0x137d   :  { %v1205_v41 = vadd.f32 %v1258_v36, %v1204_v40 }
0x137e   :  { %1215 = vst.msk [vmem:[#allocation7 + $0x8] sm:$0xff] %vm1213_vm10, %v1210_v39 }
0x137f   :  { %1214 = vst.msk [vmem:[#allocation7] sm:$0xff] %vm1213_vm10, %v1205_v41 }
0x1380   :  { %1579 = shalt.err (!%p1576_p12)
}
0x1381   :  { %s1580_s5 = scalar_lea.hbm %s1893_s6, 256 }
0x1382   :  { %p1581_p13 = scmp.ne.s32.totalorder %s1893_s6, %s1580_s5  ;;  %p1584_p0 = scmp.lt.u32.totalorder %s1580_s5, %s1893_s6 }
0x1384   :  { %p1586_p1 = pnand %p1584_p0, %p1581_p13 }
0x1386   :  { %1589 = shalt.err (!%p1586_p1)
}
0x1387   :  { %s1600_s3 = smov 128   ;;  %s1601_s21 = smov 8  }
0x1388   :  { %1227 = dma.vmem_to_hbm [thread:$0]  %s1222_s1, 256, %s1893_s6, [#allocation6], %s1600_s3, %s1600_s3, %s1601_s21  }
0x1389   :  { %1592 = dma.done.wait [#allocation6], 256  }
0x138a   :  { %1593 = vsyncadd [#allocation6], 4294967040 }
0x138b   :  { %1231 = vsyncpa [#allocation5], 1 }
0x138c   :  { %1232 = vsyncpa [#allocation6], 1 }

</bundles_post_ra>
